<compile_context>
chip_gen: v7x
topology: tpu7x:2x2x1
jax: 0.10.0
libtpu: 0.0.40
codegen_flags: <defaults>
</compile_context>

<pallas_src>
import jax
import jax.numpy as jnp
from jax.experimental import pallas as pl
from jax.experimental.pallas import tpu as pltpu


def _enc_dec_kernel(x_ref, w1_ref, b1_ref, w2_ref, b2_ref, o_ref):
    # Encoder: h = relu(x @ W1 + b1) -- bf16 MXU inputs, f32 accumulate, f32 VPU math.
    h = jnp.dot(x_ref[...], w1_ref[...], preferred_element_type=jnp.float32)
    h = jnp.maximum(h + b1_ref[...], 0.0)            # b1 is [1, d_h], broadcasts over rows
    # Decoder: y = h @ W2 + b2 -- cast h to bf16 so the second dot also hits the MXU.
    y = jnp.dot(h.astype(w2_ref.dtype), w2_ref[...],
                preferred_element_type=jnp.float32)
    o_ref[...] = (y + b2_ref[...]).astype(o_ref.dtype)


def encode_decode(x, w1, b1, w2, b2, *, tm=256, out_dtype=jnp.float32):
    """Fused encoder->decoder: relu(x @ W1 + b1) @ W2 + b2.

    1-D grid over batch-row tiles; weights/biases are VMEM-resident, single-buffered.
    Matmul inputs are bf16 (MXU); accumulation and elementwise math are f32.
    """
    batch, d_in = x.shape
    d_h = w1.shape[1]
    d_out = w2.shape[1]
    assert w1.shape == (d_in, d_h) and w2.shape == (d_h, d_out)
    # Lane-dense requirement: feature dims must be 128-multiples (256 preferred on v6e/v7x).
    assert d_in % 128 == 0 and d_h % 128 == 0 and d_out % 128 == 0, (
        "feature dims must be multiples of 128 for lane-dense tiles")
    assert tm % 8 == 0

    # Pad batch rows up to a multiple of the row tile (sliced back below).
    m_pad = pl.cdiv(batch, tm) * tm
    if m_pad != batch:
        x = jnp.pad(x, ((0, m_pad - batch), (0, 0)))

    # bf16 MXU inputs; biases stay f32 and are presented as [1, d] rows.
    x_bf = x.astype(jnp.bfloat16)
    w1_bf = w1.astype(jnp.bfloat16)
    w2_bf = w2.astype(jnp.bfloat16)
    b1_2d = b1.reshape(1, d_h).astype(jnp.float32)
    b2_2d = b2.reshape(1, d_out).astype(jnp.float32)

    grid = (m_pad // tm,)
    out_bytes = jnp.dtype(out_dtype).itemsize

    # Explicit VMEM budget: double-buffered x/out tiles, single-buffered resident weights,
    # plus the f32 intermediate h. Capped at v7x's 64 MiB physical VMEM.
    working_set = (
        2 * tm * d_in * 2          # x tile, bf16, double-buffered
        + d_in * d_h * 2           # W1 resident, bf16, single-buffered
        + d_h * d_out * 2          # W2 resident, bf16, single-buffered
        + (d_h + d_out) * 4        # biases, f32
        + 2 * tm * d_out * out_bytes   # out tile, double-buffered
        + tm * d_h * 4             # h intermediate, f32
    )
    vmem_limit = int(min(max(2 * working_set + (4 << 20), 16 << 20), 64 << 20))

    flops = 2 * m_pad * (d_in * d_h + d_h * d_out)
    bytes_accessed = (m_pad * d_in * 2 + d_in * d_h * 2 + d_h * d_out * 2
                      + (d_h + d_out) * 4 + m_pad * d_out * out_bytes)

    out = pl.pallas_call(
        _enc_dec_kernel,
        out_shape=jax.ShapeDtypeStruct((m_pad, d_out), out_dtype),
        grid=grid,
        in_specs=[
            # x row tile: pipelined (double-buffered) over the grid.
            pl.BlockSpec((tm, d_in), lambda i: (i, 0)),
            # Weights / biases: constant index map -> VMEM-resident; single-buffered.
            pl.BlockSpec((d_in, d_h), lambda i: (0, 0), pipeline_mode=pl.Buffered(1)),
            pl.BlockSpec((1, d_h), lambda i: (0, 0), pipeline_mode=pl.Buffered(1)),
            pl.BlockSpec((d_h, d_out), lambda i: (0, 0), pipeline_mode=pl.Buffered(1)),
            pl.BlockSpec((1, d_out), lambda i: (0, 0), pipeline_mode=pl.Buffered(1)),
        ],
        out_specs=pl.BlockSpec((tm, d_out), lambda i: (i, 0)),
        compiler_params=pltpu.CompilerParams(
            dimension_semantics=("parallel",),      # row tiles shard across TCs (v7x)
            vmem_limit_bytes=vmem_limit),
        cost_estimate=pl.CostEstimate(flops=flops, transcendentals=0,
                                      bytes_accessed=bytes_accessed),
    )(x_bf, w1_bf, b1_2d, w2_bf, b2_2d)

    return out[:batch]


class ModelDummyWrapper:
    """JAX counterpart of the PyTorch ModelDummyWrapper."""

    def __init__(self, encoder_params, decoder_params):
        self.encoder_params = encoder_params  # (w1, b1)
        self.decoder_params = decoder_params  # (w2, b2)

    def forward(self, x):
        # Faithful to the reference: forward body is `pass` -> returns None.
        # TODO(synk): reference forward is a no-op; real compute exposed via encode_decode().
        return None

    def encode_decode(self, x):
        w1, b1 = self.encoder_params
        w2, b2 = self.decoder_params
        return encode_decode(x, w1, b1, w2, b2)


if __name__ == "__main__":
    key = jax.random.PRNGKey(0)
    k_x, k_w1, k_b1, k_w2, k_b2 = jax.random.split(key, 5)

    # 256-aligned (full v6e/v7x MXU tiles); batch=512 with tm=256 -> grid=(2,) so both
    # v7x TensorCores get a row-tile block.
    batch, d_in, d_h, d_out = 512, 256, 256, 256

    x = jax.random.normal(k_x, (batch, d_in), dtype=jnp.float32)
    w1 = jax.random.normal(k_w1, (d_in, d_h), dtype=jnp.float32) * 0.1
    b1 = jax.random.normal(k_b1, (1, d_h), dtype=jnp.float32) * 0.1
    w2 = jax.random.normal(k_w2, (d_h, d_out), dtype=jnp.float32) * 0.1
    b2 = jax.random.normal(k_b2, (1, d_out), dtype=jnp.float32) * 0.1

    model = ModelDummyWrapper((w1, b1), (w2, b2))

    # Faithful forward: returns None (reference forward is `pass`).
    out_none = model.forward(x)
    assert out_none is None

    # Run the fused Pallas encoder->decoder kernel and verify.
    y = model.encode_decode(x)
    y = jax.block_until_ready(y)

    # Reference with the same bf16 rounding of MXU inputs, f32 math elsewhere.
    xb = x.astype(jnp.bfloat16).astype(jnp.float32)
    w1b = w1.astype(jnp.bfloat16).astype(jnp.float32)
    w2b = w2.astype(jnp.bfloat16).astype(jnp.float32)
    h_ref = jnp.maximum(
        jnp.dot(xb, w1b, precision=jax.lax.Precision.HIGHEST) + b1, 0.0)
    hb = h_ref.astype(jnp.bfloat16).astype(jnp.float32)
    ref = jnp.dot(hb, w2b, precision=jax.lax.Precision.HIGHEST) + b2

    assert y.shape == (batch, d_out)
    assert jnp.allclose(y, ref, atol=1e-2, rtol=1e-2), float(jnp.max(jnp.abs(y - ref)))

    print("KERNEL_OK")
</pallas_src>

<mosaic_0001>
module attributes {stable_mosaic.version = 11 : i64} {
  func.func @_enc_dec_kernel(%arg0: i32, %arg1: memref<256x256xbf16, #tpu.memory_space<vmem>>, %arg2: memref<256x256xbf16, #tpu.memory_space<vmem>>, %arg3: memref<1x256xf32, #tpu.memory_space<vmem>>, %arg4: memref<256x256xbf16, #tpu.memory_space<vmem>>, %arg5: memref<1x256xf32, #tpu.memory_space<vmem>>, %arg6: memref<256x256xf32, #tpu.memory_space<vmem>>) attributes {dimension_semantics = [#tpu.dimension_semantics<parallel>], iteration_bounds = array<i64: 2>, scalar_prefetch = 0 : i64, scratch_operands = 0 : i64, tpu.core_type = #tpu.core_type<tc>, window_params = [{transform_indices = @transform_0, window_bounds = array<i64: 256, 256>}, {pipeline_mode = #tpu.pipeline_mode<synchronous>, transform_indices = @transform_1, window_bounds = array<i64: 256, 256>}, {pipeline_mode = #tpu.pipeline_mode<synchronous>, transform_indices = @transform_2, window_bounds = array<i64: 1, 256>}, {pipeline_mode = #tpu.pipeline_mode<synchronous>, transform_indices = @transform_3, window_bounds = array<i64: 256, 256>}, {pipeline_mode = #tpu.pipeline_mode<synchronous>, transform_indices = @transform_4, window_bounds = array<i64: 1, 256>}, {transform_indices = @transform_5, window_bounds = array<i64: 256, 256>}]} {
    %c0 = arith.constant 0 : index
    %c0_0 = arith.constant 0 : index
    %0 = vector.load %arg1[%c0, %c0_0] : memref<256x256xbf16, #tpu.memory_space<vmem>>, vector<256x256xbf16>
    %c0_1 = arith.constant 0 : index
    %c0_2 = arith.constant 0 : index
    %1 = vector.load %arg2[%c0_1, %c0_2] : memref<256x256xbf16, #tpu.memory_space<vmem>>, vector<256x256xbf16>
    %cst = arith.constant dense<0.000000e+00> : vector<256x256xf32>
    %2 = tpu.matmul %0, %1, %cst {dimension_numbers = #tpu.dot_dimension_numbers<[1], [0], [0], [1], [0, 0, 1, 1], [], []>} : vector<256x256xbf16>, vector<256x256xbf16>, vector<256x256xf32> -> vector<256x256xf32>
    %c0_3 = arith.constant 0 : index
    %c0_4 = arith.constant 0 : index
    %3 = vector.load %arg3[%c0_3, %c0_4] : memref<1x256xf32, #tpu.memory_space<vmem>>, vector<1x256xf32>
    %4 = vector.broadcast %3 : vector<1x256xf32> to vector<256x256xf32>
    %5 = arith.addf %2, %4 : vector<256x256xf32>
    %cst_5 = arith.constant 0.000000e+00 : f32
    %6 = vector.broadcast %cst_5 : f32 to vector<256x256xf32>
    %7 = arith.maximumf %5, %6 : vector<256x256xf32>
    %8 = arith.truncf %7 : vector<256x256xf32> to vector<256x256xbf16>
    %c0_6 = arith.constant 0 : index
    %c0_7 = arith.constant 0 : index
    %9 = vector.load %arg4[%c0_6, %c0_7] : memref<256x256xbf16, #tpu.memory_space<vmem>>, vector<256x256xbf16>
    %cst_8 = arith.constant dense<0.000000e+00> : vector<256x256xf32>
    %10 = tpu.matmul %8, %9, %cst_8 {dimension_numbers = #tpu.dot_dimension_numbers<[1], [0], [0], [1], [0, 0, 1, 1], [], []>} : vector<256x256xbf16>, vector<256x256xbf16>, vector<256x256xf32> -> vector<256x256xf32>
    %c0_9 = arith.constant 0 : index
    %c0_10 = arith.constant 0 : index
    %11 = vector.load %arg5[%c0_9, %c0_10] : memref<1x256xf32, #tpu.memory_space<vmem>>, vector<1x256xf32>
    %12 = vector.broadcast %11 : vector<1x256xf32> to vector<256x256xf32>
    %13 = arith.addf %10, %12 : vector<256x256xf32>
    %c0_11 = arith.constant 0 : index
    %c0_12 = arith.constant 0 : index
    %14 = vector.load %arg6[%c0_11, %c0_12] : memref<256x256xf32, #tpu.memory_space<vmem>>, vector<256x256xf32>
    tpu.vector_store %arg6[%c0_11, %c0_12], %13 {strides = array<i32>} : memref<256x256xf32, #tpu.memory_space<vmem>>, vector<256x256xf32>,
    return
  }
  func.func @transform_0(%arg0: i32) -> (i32, i32) {
    %c0_i32 = arith.constant 0 : i32
    %c0_i32_0 = arith.constant 0 : i32
    return %arg0, %c0_i32 : i32, i32
  }
  func.func @transform_1(%arg0: i32) -> (i32, i32) {
    %c0_i32 = arith.constant 0 : i32
    %c0_i32_0 = arith.constant 0 : i32
    %c0_i32_1 = arith.constant 0 : i32
    return %c0_i32, %c0_i32_0 : i32, i32
  }
  func.func @transform_2(%arg0: i32) -> (i32, i32) {
    %c0_i32 = arith.constant 0 : i32
    %c0_i32_0 = arith.constant 0 : i32
    %c0_i32_1 = arith.constant 0 : i32
    return %c0_i32, %c0_i32_0 : i32, i32
  }
  func.func @transform_3(%arg0: i32) -> (i32, i32) {
    %c0_i32 = arith.constant 0 : i32
    %c0_i32_0 = arith.constant 0 : i32
    %c0_i32_1 = arith.constant 0 : i32
    return %c0_i32, %c0_i32_0 : i32, i32
  }
  func.func @transform_4(%arg0: i32) -> (i32, i32) {
    %c0_i32 = arith.constant 0 : i32
    %c0_i32_0 = arith.constant 0 : i32
    %c0_i32_1 = arith.constant 0 : i32
    return %c0_i32, %c0_i32_0 : i32, i32
  }
  func.func @transform_5(%arg0: i32) -> (i32, i32) {
    %c0_i32 = arith.constant 0 : i32
    %c0_i32_0 = arith.constant 0 : i32
    return %arg0, %c0_i32 : i32, i32
  }
}

</mosaic_0001>

<bundles_post_ra>
// kernel: tpu_custom_call.1
= control target key start
LH: loop header
LB: loop body
LE: loop exit
PB: predicated region body
PF: predicated region fallthrough
CT: control target
= control target key end

     0   :  { %10 = vsyncpa [#allocation3], 0  ;;  %s2558_s0 = inlined_call_operand.hbm [shape: bf16[512,256], index: 0, kind: input, shape index: {}]   ;;  %s2559_s1 = inlined_call_operand.hbm [shape: bf16[256,256], index: 1, kind: input, shape index: {}]   ;;  %s2560_s2 = inlined_call_operand.vmem [shape: f32[1,256], index: 2, kind: input, shape index: {}]   ;;  %s2561_s3 = inlined_call_operand.hbm [shape: bf16[256,256], index: 3, kind: input, shape index: {}]   ;;  %s2562_s4 = inlined_call_operand.vmem [shape: f32[1,256], index: 4, kind: input, shape index: {}]   ;;  %s2563_s5 = inlined_call_operand.hbm [shape: f32[512,256], index: 5, kind: output, shape index: {}]  }
   0x1   :  { %12 = vsyncpa [#allocation3 + $0x1], 0 }
   0x2   :  { %13 = vsyncpa [#allocation6], 0 }
   0x3   :  { %14 = vsyncpa [#allocation4], 0 }
   0x4   :  { %16 = vsyncpa [#allocation4 + $0x1], 0  ;;  %s2059_s18 = smov 0   ;;  %s2061_s19 = smov 0  }
   0x5   :  { %s2063_s20 = smov 0   ;;  %s2065_s21 = smov 0  }
   0x6 LB: > { %s2080_s22 = sadd.s32 4294967295, %s2019_s21   ;;  %s1528_s23 = sadd.s32 4294967294, %s2019_s21   ;;  %s2019_s21 = sphi %s2065_s21, %s2583_s21   ;;  %s2015_s20 = sphi %s2063_s20, %s2582_s20   ;;  %s2011_s19 = sphi %s2061_s19, %s2581_s19   ;;  %s2007_s18 = sphi %s2059_s18, %s2580_s18  }
   0x7   : > { %p42_p0 = scmp.ne.s32.totalorder %s2011_s19, %s2007_s18  ;;  %p2564_p1 = scmp.eq.s32.totalorder %s2080_s22, 0 }
   0x8   : > { %p156_p3 = scmp.eq.s32.totalorder %s1528_s23, 1  ;;  %p1529_p5 = scmp.ge.s32.totalorder %s2019_s21, 1 }
   0x9   : > { %p2089_p4 = por %p2564_p1, %p42_p0  ;;  %p163_p7 = scmp.lt.s32.totalorder %s2019_s21, 3 }
   0xa   : > { %p2094_p6 = por %p156_p3, %p42_p0  ;;  %s2021_s27 = smov [#allocation5]  }
   0xb   : > { %s2567_s24 = scalar_select %p2089_p4, 1, 0 }
   0xc   : > { %s2568_s25 = scalar_select %p2094_p6, 1, 0 }
   0xd   : > { %p2099_p8 = pnand %p1529_p5, %p163_p7  ;;  %s175_s28 = sshll.u32 %s2021_s27, 4  ;;  %s2103_s28 = int_to_ptr.vmem [resolvable:$true] %s175_s28 }
   0xe   : > { %s2022_s30 = smov [#allocation7]   ;;  %s1863_s9 = scalar_lea.hbm %s2559_s1, 4096 }
   0xf   : > { %p1660_p9 = pneg %p2099_p8  ;;  %s191_s6 = sshll.u32 %s2022_s30, 4  ;;  %s2114_s6 = int_to_ptr.vmem [resolvable:$true] %s191_s6 }
  0x10   : > { %p1864_p12 = scmp.ne.s32.totalorder %s2559_s1, %s1863_s9  ;;  %p1870_p5 = scmp.lt.u32.totalorder %s1863_s9, %s2559_s1 }
  0x11   : > { %p2110_p11 = pnand %p1660_p9, %p2564_p1 }
  0x13   : > { %p1865_p13 = pneg %p2110_p11 }
  0x15   : > { %p1866_p0 = pnand %p1865_p13, %p1864_p12 }
  0x17   : > { %p1867_p3 = pneg %p1866_p0 }
  0x19   : > { %p1872_p7 = pnand %p1870_p5, %p1867_p3 }
  0x1b   : > { %1875 = shalt.err (!%p1872_p7)
}
  0x1c   : > { %s1876_s14 = scalar_lea.vmem %s2103_s28, 4096  ;;  %p1884_p2 = scmp.lt.s32.totalorder %s2103_s28, %s2103_s28 }
  0x1d   : > { %p1877_p9 = scmp.ne.s32.totalorder %s2103_s28, %s1876_s14  ;;  %p1885_p12 = scmp.lt.s32.totalorder %s1876_s14, %s1876_s14 }
  0x1f   : > { %p1879_p10 = pnand %p1877_p9, %p1865_p13  ;;  %p1886_p0 = por %p1885_p12, %p1884_p2 }
  0x21   : > { %p1880_p1 = pneg %p1879_p10 }
  0x23   : > { %p1887_p6 = pnand %p1886_p0, %p1880_p1 }
  0x25   : > { %1890 = shalt.err (!%p1887_p6)
}
  0x26   : > { %s2023_s15 = smov 128   ;;  %s2024_s16 = smov 8  }
  0x27   : > { %1663 = dma.hbm_to_vmem [thread:$0]  (!%p2110_p11), %s2559_s1, 4096, %s2103_s28, [#allocation6], %s2023_s15, %s2023_s15, %s2024_s16  }
  0x28   : > { %s1891_s7 = scalar_lea.hbm %s2561_s3, 4096 }
  0x29   : > { %p1892_p1 = scmp.ne.s32.totalorder %s2561_s3, %s1891_s7  ;;  %p1898_p10 = scmp.lt.u32.totalorder %s1891_s7, %s2561_s3 }
  0x2b   : > { %p1894_p2 = pnand %p1892_p1, %p1865_p13 }
  0x2d   : > { %p1895_p6 = pneg %p1894_p2 }
  0x2f   : > { %p1900_p3 = pnand %p1898_p10, %p1895_p6 }
  0x31   : > { %1903 = shalt.err (!%p1900_p3)
}
  0x32   : > { %s1904_s28 = scalar_lea.vmem %s2114_s6, 4096  ;;  %p1912_p12 = scmp.lt.s32.totalorder %s2114_s6, %s2114_s6 }
  0x33   : > { %p1905_p5 = scmp.ne.s32.totalorder %s2114_s6, %s1904_s28  ;;  %p1913_p0 = scmp.lt.s32.totalorder %s1904_s28, %s1904_s28 }
  0x35   : > { %p1907_p7 = pnand %p1905_p5, %p1865_p13  ;;  %p1914_p1 = por %p1913_p0, %p1912_p12 }
  0x37   : > { %p1908_p9 = pneg %p1907_p7 }
  0x39   : > { %p1915_p2 = pnand %p1914_p1, %p1908_p9 }
  0x3b   : > { %1918 = shalt.err (!%p1915_p2)
}
  0x3c   : > { %1666 = dma.hbm_to_vmem [thread:$0]  (!%p2110_p11), %s2561_s3, 4096, %s2114_s6, [#allocation6], %s2023_s15, %s2023_s15, %s2024_s16  }
  0x3d   : > { %s2175_s29 = sadd.s32 1, %s2019_s21   ;;  %s29_s14 = sadd.s32 1, %s2015_s20 }
  0x3e   : > { %s26_s17 = ssub.s32 %s2019_s21, %s2175_s29  ;;  %p36_p13 = scmp.ne.s32.totalorder %s2015_s20, %s2011_s19 }
  0x3f   : > { %p27_p6 = scmp.eq.s32.totalorder %s26_s17, 0  ;;  %p37_p10 = scmp.eq.s32.totalorder %s2019_s21, 0 }
  0x40   : > { %p2571_p3 = scmp.eq.s32.totalorder %s2080_s22, 1  ;;  %p1677_p7 = scmp.lt.s32.totalorder %s2019_s21, 2 }
  0x41   : > { %s2191_s27 = scalar_select %p27_p6, %s2015_s20, %s29_s14  }
  0x42   : > { %p2185_p5 = por %p2571_p3, %p36_p13  ;;  %p38_p9 = por %p37_p10, %p36_p13 }
  0x43   : > { %s208_s30 = sand.u32 1, %s2015_s20   ;;  %s1645_s6 = sshll.u32 %s2019_s21, 12 }
  0x44   : > { %s2572_s23 = scalar_select %p2185_p5, 1, 0 }
  0x45   : > { %s1533_s7 = sshll.u32 %s208_s30, 8  ;;  %s2198_s10 = scalar_lea.hbm %s2558_s0, %s1645_s6 }
  0x46   : > { %s212_s11 = scalar_lea.vmem [#allocation2], %s1533_s7  ;;  %p2202_p11 = pnand %p1677_p7, %p38_p9 }
  0x47   : > { %s220_s28 = sshll.u32 %s212_s11, 4  ;;  %s2206_s13 = scalar_lea.sflag [#allocation3], %s208_s30  ;;  %s2200_s28 = int_to_ptr.vmem [resolvable:$true] %s220_s28 }
  0x48   : > { %s1919_s14 = scalar_lea.hbm %s2198_s10, 4096  ;;  %p1921_p0 = pneg %p2202_p11 }
  0x49   : > { %p1920_p12 = scmp.ne.s32.totalorder %s2198_s10, %s1919_s14  ;;  %s1924_s6 = scalar_lea.hbm %s2558_s0, 8192 }
  0x4a   : > { %p1925_p13 = scmp.lt.u32.totalorder %s2198_s10, %s2558_s0  ;;  %p1926_p6 = scmp.lt.u32.totalorder %s1924_s6, %s1919_s14 }
  0x4b   : > { %p1922_p1 = pnand %p1921_p0, %p1920_p12  ;;  %p1928_p3 = scmp.lt.u32.totalorder %s1919_s14, %s2198_s10 }
  0x4c   : > { %p1927_p10 = por %p1926_p6, %p1925_p13 }
  0x4d   : > { %p1923_p2 = pneg %p1922_p1 }
  0x4e   : > { %p1929_p7 = por %p1928_p3, %p1927_p10 }
  0x50   : > { %p1930_p9 = pnand %p1929_p7, %p1923_p2 }
  0x52   : > { %1933 = shalt.err (!%p1930_p9)
}
  0x53   : > { %s1934_s30 = scalar_lea.vmem %s2200_s28, 4096  ;;  %s2025_s11 = smov [#allocation2]  }
  0x54   : > { %p1935_p12 = scmp.ne.s32.totalorder %s2200_s28, %s1934_s30  ;;  %s1939_s17 = sshll.u32 %s2025_s11, 4  ;;  %s1940_s17 = int_to_ptr.vmem [resolvable:$false] %s1939_s17 }
  0x55   : > { %s1941_s7 = scalar_lea.vmem %s1940_s17, 8192  ;;  %p1942_p4 = scmp.lt.s32.totalorder %s2200_s28, %s1940_s17 }
  0x56   : > { %p1937_p1 = pnand %p1935_p12, %p1921_p0  ;;  %p1943_p13 = scmp.lt.s32.totalorder %s1941_s7, %s1934_s30 }
  0x58   : > { %p1938_p5 = pneg %p1937_p1  ;;  %p1944_p6 = por %p1943_p13, %p1942_p4 }
  0x5a   : > { %p1945_p10 = pnand %p1944_p6, %p1938_p5 }
  0x5c   : > { %1948 = shalt.err (!%p1945_p10)
}
  0x5d   : > { %1670 = dma.hbm_to_vmem [thread:$0]  (!%p2202_p11), %s2198_s10, 4096, %s2200_s28, %s2206_s13, %s2023_s15, %s2023_s15, %s2024_s16  }
  0x5e   : > { %232 = sbr.rel (%p2099_p8) target bundleno = 744 (0x2e8), region = 40  ;;  %s2240_s14 = sand.u32 (!%p2099_p8), 1, %s2011_s19  }
  0x5f   : > { %s1538_s6 = sshll.u32 (!%p2099_p8), %s2240_s14, 8  ;;  %s235_s8 = scalar_lea.sflag (!%p2099_p8), [#allocation3], %s2240_s14 }
  0x60   : > { %s2244_s9 = scalar_lea.vmem (!%p2099_p8), [#allocation2], %s1538_s6  ;;  %p2574_p4 = scmp.ne.s32.totalorder (!%p2099_p8), %s2567_s24, 0 }
  0x65   : > { %1994 = dma.done.wait (%p2574_p4), %s235_s8, 4096  }
  0x66   : > { %1996 = vsyncadd (%p2574_p4), %s235_s8, 4294963200  ;;  %p2575_p5 = scmp.eq.s32.totalorder %s2080_s22, 0 }
  0x68   : > { %1998 = dma.done.wait (%p2575_p5), [#allocation6], 8192   ;;  %p2576_p8 = pmov %p2575_p5 }
  0x69   : > { %v1719_v0 = vld [vmem:[#allocation5 + $0x4] ss:$8 sps:$4 sm:$0xff]   ;;  %v1721_v1 = vld [vmem:[#allocation5] ss:$8 sps:$4 sm:$0xff]   ;;  %v1722_v2 = vld [vmem:[#allocation5 + $0x14] ss:$8 sps:$4 sm:$0xff]  }
  0x6a   : > { %2000 = vsyncadd (%p2576_p8), [#allocation6], 4294959104  ;;  %671 = vmatprep.subr.bf16.mxu0 %v1719_v0  ;;  %v1724_v3 = vld [vmem:[#allocation5 + $0x10] ss:$8 sps:$4 sm:$0xff]   ;;  %v1725_v4 = vld [vmem:[#allocation5 + $0x24] ss:$8 sps:$4 sm:$0xff]  }
  0x6b   : > { %672 = vmatpush1.bf16.msra.mxu0 %v1721_v1  ;;  %v1727_v5 = vld [vmem:[#allocation5 + $0x20] ss:$8 sps:$4 sm:$0xff]   ;;  %v1728_v6 = vld [vmem:[#allocation5 + $0x34] ss:$8 sps:$4 sm:$0xff]   ;;  %v1730_v7 = vld [vmem:[#allocation5 + $0x30] ss:$8 sps:$4 sm:$0xff]  }
  0x6c   : > { %673 = vmatprep.subr.bf16.mxu0 %v1722_v2  ;;  %v1731_v8 = vld [vmem:[#allocation5 + $0x44] ss:$8 sps:$4 sm:$0xff]   ;;  %v1733_v9 = vld [vmem:[#allocation5 + $0x40] ss:$8 sps:$4 sm:$0xff]   ;;  %v1734_v10 = vld [vmem:[#allocation5 + $0x54] ss:$8 sps:$4 sm:$0xff]  }
  0x6d   : > { %v1736_v11 = vld [vmem:[#allocation5 + $0x50] ss:$8 sps:$4 sm:$0xff]   ;;  %v1737_v12 = vld [vmem:[#allocation5 + $0x64] ss:$8 sps:$4 sm:$0xff]   ;;  %v1739_v14 = vld [vmem:[#allocation5 + $0x60] ss:$8 sps:$4 sm:$0xff]  }
  0x6e   : > { %v1769_v13 = vld [vmem:[%s2244_s9 + $0x4] ss:$8 sps:$4 sm:$0xff]   ;;  %v1740_v15 = vld [vmem:[#allocation5 + $0x74] ss:$8 sps:$4 sm:$0xff]   ;;  %v1742_v16 = vld [vmem:[#allocation5 + $0x70] ss:$8 sps:$4 sm:$0xff]  }
  0x6f   : > { %674 = vmatpush1.bf16.msra.mxu0 %v1724_v3  ;;  %703 = vmatprep.mubr.bf16.mxu0 %v1769_v13  ;;  %v1743_v17 = vld [vmem:[#allocation5 + $0x84] ss:$8 sps:$4 sm:$0xff]   ;;  %v1745_v18 = vld [vmem:[#allocation5 + $0x80] ss:$8 sps:$4 sm:$0xff]   ;;  %v1746_v19 = vld [vmem:[#allocation5 + $0x94] ss:$8 sps:$4 sm:$0xff]  }
  0x70   : > { %675 = vmatprep.subr.bf16.mxu0 %v1725_v4  ;;  %v1748_v20 = vld [vmem:[#allocation5 + $0x90] ss:$8 sps:$4 sm:$0xff]   ;;  %v1749_v21 = vld [vmem:[#allocation5 + $0xa4] ss:$8 sps:$4 sm:$0xff]   ;;  %v1751_v22 = vld [vmem:[#allocation5 + $0xa0] ss:$8 sps:$4 sm:$0xff]  }
  0x71   : > { %v1752_v23 = vld [vmem:[#allocation5 + $0xb4] ss:$8 sps:$4 sm:$0xff]   ;;  %v1754_v24 = vld [vmem:[#allocation5 + $0xb0] ss:$8 sps:$4 sm:$0xff]   ;;  %v1755_v25 = vld [vmem:[#allocation5 + $0xc4] ss:$8 sps:$4 sm:$0xff]  }
  0x72   : > { %v1757_v26 = vld [vmem:[#allocation5 + $0xc0] ss:$8 sps:$4 sm:$0xff]   ;;  %v1758_v27 = vld [vmem:[#allocation5 + $0xd4] ss:$8 sps:$4 sm:$0xff]   ;;  %v1760_v28 = vld [vmem:[#allocation5 + $0xd0] ss:$8 sps:$4 sm:$0xff]  }
  0x73   : > { %676 = vmatpush1.bf16.msra.mxu0 %v1727_v5  ;;  %v1761_v29 = vld [vmem:[#allocation5 + $0xe4] ss:$8 sps:$4 sm:$0xff]   ;;  %v1763_v30 = vld [vmem:[#allocation5 + $0xe0] ss:$8 sps:$4 sm:$0xff]   ;;  %v1764_v31 = vld [vmem:[#allocation5 + $0xf4] ss:$8 sps:$4 sm:$0xff]  }
  0x74   : > { %677 = vmatprep.subr.bf16.mxu0 %v1728_v6  ;;  %v1815_v32 = vld [vmem:[#allocation7 + $0x4] ss:$8 sps:$4 sm:$0xff]   ;;  %v1817_v33 = vld [vmem:[#allocation7] ss:$8 sps:$4 sm:$0xff]   ;;  %v1818_v34 = vld [vmem:[#allocation7 + $0x14] ss:$8 sps:$4 sm:$0xff]  }
  0x75   : > { %v1766_v35 = vld [vmem:[#allocation5 + $0xf0] ss:$8 sps:$4 sm:$0xff]   ;;  %1164 = vmatprep.subr.bf16.mxu1 %v1815_v32  ;;  %v1767_v37 = vld [vmem:[%s2244_s9] ss:$8 sps:$4 sm:$0xff]   ;;  %v1821_v38 = vld [vmem:[#allocation7 + $0x24] ss:$8 sps:$4 sm:$0xff]   ;;  %v341_v32 = vlaneseq }
  0x76   : > { %1165 = vmatpush1.bf16.msra.mxu1 %v1817_v33  ;;  %v1820_v36 = vld [vmem:[#allocation7 + $0x10] ss:$8 sps:$4 sm:$0xff]   ;;  %v1770_v39 = vld [vmem:[%s2244_s9 + $0x14] ss:$8 sps:$4 sm:$0xff]   ;;  %v1823_v40 = vld [vmem:[#allocation7 + $0x20] ss:$8 sps:$4 sm:$0xff]  }
  0x77   : > { %678 = vmatpush1.bf16.msra.mxu0 %v1730_v7  ;;  %1166 = vmatprep.subr.bf16.mxu1 %v1818_v34  ;;  %v1824_v41 = vld [vmem:[#allocation7 + $0x34] ss:$8 sps:$4 sm:$0xff]   ;;  %v1826_v42 = vld [vmem:[#allocation7 + $0x30] ss:$8 sps:$4 sm:$0xff]   ;;  %v1827_v44 = vld [vmem:[#allocation7 + $0x44] ss:$8 sps:$4 sm:$0xff]  }
  0x78   : > { %679 = vmatprep.subr.bf16.mxu0 %v1731_v8  ;;  %v1772_v43 = vld [vmem:[%s2244_s9 + $0x10] ss:$8 sps:$4 sm:$0xff]   ;;  %v1773_v45 = vld [vmem:[%s2244_s9 + $0x24] ss:$8 sps:$4 sm:$0xff]   ;;  %v1829_v46 = vld [vmem:[#allocation7 + $0x40] ss:$8 sps:$4 sm:$0xff]  }
  0x79   : > { %v1830_v47 = vld [vmem:[#allocation7 + $0x54] ss:$8 sps:$4 sm:$0xff]   ;;  %v1832_v48 = vld [vmem:[#allocation7 + $0x50] ss:$8 sps:$4 sm:$0xff]   ;;  %v1775_v49 = vld [vmem:[%s2244_s9 + $0x20] ss:$8 sps:$4 sm:$0xff]  }
  0x7a   : > { %1167 = vmatpush1.bf16.msra.mxu1 %v1820_v36  ;;  %v1833_v50 = vld [vmem:[#allocation7 + $0x64] ss:$8 sps:$4 sm:$0xff]   ;;  %v1776_v51 = vld [vmem:[%s2244_s9 + $0x34] ss:$8 sps:$4 sm:$0xff]   ;;  %v1835_v52 = vld [vmem:[#allocation7 + $0x60] ss:$8 sps:$4 sm:$0xff]  }
  0x7b   : > { %680 = vmatpush1.bf16.msra.mxu0 %v1733_v9  ;;  %1168 = vmatprep.subr.bf16.mxu1 %v1821_v38  ;;  %v1836_v53 = vld [vmem:[#allocation7 + $0x74] ss:$8 sps:$4 sm:$0xff]   ;;  %v1838_v54 = vld [vmem:[#allocation7 + $0x70] ss:$8 sps:$4 sm:$0xff]   ;;  %v1839_v56 = vld [vmem:[#allocation7 + $0x84] ss:$8 sps:$4 sm:$0xff]  }
  0x7c   : > { %681 = vmatprep.subr.bf16.mxu0 %v1734_v10  ;;  %v1778_v55 = vld [vmem:[%s2244_s9 + $0x30] ss:$8 sps:$4 sm:$0xff]   ;;  %v1779_v57 = vld [vmem:[%s2244_s9 + $0x44] ss:$8 sps:$4 sm:$0xff]   ;;  %v1841_v58 = vld [vmem:[#allocation7 + $0x80] ss:$8 sps:$4 sm:$0xff]  }
  0x7d   : > { %v1842_v59 = vld [vmem:[#allocation7 + $0x94] ss:$8 sps:$4 sm:$0xff]   ;;  %v1844_v60 = vld [vmem:[#allocation7 + $0x90] ss:$8 sps:$4 sm:$0xff]   ;;  %v1781_v61 = vld [vmem:[%s2244_s9 + $0x40] ss:$8 sps:$4 sm:$0xff]  }
  0x7e   : > { %1169 = vmatpush1.bf16.msra.mxu1 %v1823_v40  ;;  %v1845_v62 = vld [vmem:[#allocation7 + $0xa4] ss:$8 sps:$4 sm:$0xff]   ;;  %v1782_v63 = vld [vmem:[%s2244_s9 + $0x54] ss:$8 sps:$4 sm:$0xff]   ;;  %v1847_v0 = vld [vmem:[#allocation7 + $0xa0] ss:$8 sps:$4 sm:$0xff]  }
  0x7f   : > { %682 = vmatpush1.bf16.msra.mxu0 %v1736_v11  ;;  %1170 = vmatprep.subr.bf16.mxu1 %v1824_v41  ;;  %v1848_v1 = vld [vmem:[#allocation7 + $0xb4] ss:$8 sps:$4 sm:$0xff]   ;;  %v1850_v2 = vld [vmem:[#allocation7 + $0xb0] ss:$8 sps:$4 sm:$0xff]   ;;  %v1851_v4 = vld [vmem:[#allocation7 + $0xc4] ss:$8 sps:$4 sm:$0xff]  }
  0x80   : > { %683 = vmatprep.subr.bf16.mxu0 %v1737_v12  ;;  %v1784_v3 = vld [vmem:[%s2244_s9 + $0x50] ss:$8 sps:$4 sm:$0xff]   ;;  %v1785_v5 = vld [vmem:[%s2244_s9 + $0x64] ss:$8 sps:$4 sm:$0xff]   ;;  %v1853_v6 = vld [vmem:[#allocation7 + $0xc0] ss:$8 sps:$4 sm:$0xff]  }
  0x81   : > { %v1854_v7 = vld [vmem:[#allocation7 + $0xd4] ss:$8 sps:$4 sm:$0xff]   ;;  %v1787_v8 = vld [vmem:[%s2244_s9 + $0x60] ss:$8 sps:$4 sm:$0xff]   ;;  %v1790_v10 = vld [vmem:[%s2244_s9 + $0x70] ss:$8 sps:$4 sm:$0xff]  }
  0x82   : > { %1171 = vmatpush1.bf16.msra.mxu1 %v1826_v42  ;;  %v1788_v9 = vld [vmem:[%s2244_s9 + $0x74] ss:$8 sps:$4 sm:$0xff]   ;;  %v1791_v11 = vld [vmem:[%s2244_s9 + $0x84] ss:$8 sps:$4 sm:$0xff]   ;;  %v1793_v12 = vld [vmem:[%s2244_s9 + $0x80] ss:$8 sps:$4 sm:$0xff]  }
  0x83   : > { %684 = vmatpush1.bf16.msra.mxu0 %v1739_v14  ;;  %1172 = vmatprep.subr.bf16.mxu1 %v1827_v44  ;;  %v1794_v13 = vld [vmem:[%s2244_s9 + $0x94] ss:$8 sps:$4 sm:$0xff]   ;;  %v1796_v14 = vld [vmem:[%s2244_s9 + $0x90] ss:$8 sps:$4 sm:$0xff]   ;;  %v2286_v33 = vshrl.u32 %v341_v32, 7  ;;  %s1541_s10 = sshll.u32 %s2240_s14, 9 }
  0x84   : > { %685 = vmatprep.subr.bf16.mxu0 %v1740_v15  ;;  %v1797_v15 = vld [vmem:[%s2244_s9 + $0xa4] ss:$8 sps:$4 sm:$0xff]   ;;  %s2379_s28 = scalar_lea.vmem [#allocation8], %s1541_s10  ;;  %s1647_s12 = sshll.u32 %s2080_s22, 13 }
  0x85   : > { %v343_v34 = vsub.s32 0, %v2286_v33  ;;  %v347_v36 = vsub.s32 1, %v2286_v33  ;;  %s1436_s13 = sshll.u32 %s2379_s28, 4  ;;  %s2508_s17 = scalar_lea.hbm %s2563_s5, %s1647_s12  ;;  %s2510_s13 = int_to_ptr.vmem [resolvable:$true] %s1436_s13 }
  0x86   : > { %1173 = vmatpush1.bf16.msra.mxu1 %v1829_v46  ;;  %s1422_s22 = scalar_lea.sflag [#allocation4], %s2240_s14  ;;  %s1949_s7 = scalar_lea.vmem %s2510_s13, 8192 }
  0x87   : > { %686 = vmatpush1.bf16.msra.mxu0 %v1742_v16  ;;  %1174 = vmatprep.subr.bf16.mxu1 %v1830_v47  ;;  %v1799_v16 = vld [vmem:[%s2244_s9 + $0xa0] ss:$8 sps:$4 sm:$0xff]   ;;  %p1950_p11 = scmp.ne.s32.totalorder %s2510_s13, %s1949_s7  ;;  %p2577_p0 = scmp.ne.s32.totalorder %s2572_s23, 0 }
  0x88   : > { %687 = vmatprep.subr.bf16.mxu0 %v1743_v17  ;;  %v1800_v17 = vld [vmem:[%s2244_s9 + $0xb4] ss:$8 sps:$4 sm:$0xff]   ;;  %s2026_s6 = smov [#allocation8]  }
  0x89   : > { %p1951_p2 = pnand %p1950_p11, %p2577_p0  ;;  %s1953_s8 = sshll.u32 %s2026_s6, 4  ;;  %s1954_s8 = int_to_ptr.vmem [resolvable:$false] %s1953_s8 }
  0x8a   : > { %1175 = vmatpush1.bf16.msra.mxu1 %v1832_v48  ;;  %p1956_p7 = scmp.lt.s32.totalorder %s2510_s13, %s1954_s8 }
  0x8b   : > { %688 = vmatpush1.bf16.msra.mxu0 %v1745_v18  ;;  %1176 = vmatprep.subr.bf16.mxu1 %v1833_v50  ;;  %v1856_v18 = vld [vmem:[#allocation7 + $0xd0] ss:$8 sps:$4 sm:$0xff]   ;;  %p1952_p3 = pneg %p1951_p2 }
  0x8c   : > { %689 = vmatprep.subr.bf16.mxu0 %v1746_v19  ;;  %v1802_v19 = vld [vmem:[%s2244_s9 + $0xb0] ss:$8 sps:$4 sm:$0xff]  }
  0x8e   : > { %1177 = vmatpush1.bf16.msra.mxu1 %v1835_v52 }
  0x8f   : > { %690 = vmatpush1.bf16.msra.mxu0 %v1748_v20  ;;  %1178 = vmatprep.subr.bf16.mxu1 %v1836_v53  ;;  %v1857_v20 = vld [vmem:[#allocation7 + $0xe4] ss:$8 sps:$4 sm:$0xff]  }
  0x90   : > { %691 = vmatprep.subr.bf16.mxu0 %v1749_v21  ;;  %v1803_v21 = vld [vmem:[%s2244_s9 + $0xc4] ss:$8 sps:$4 sm:$0xff]  }
  0x92   : > { %1179 = vmatpush1.bf16.msra.mxu1 %v1838_v54 }
  0x93   : > { %692 = vmatpush1.bf16.msra.mxu0 %v1751_v22  ;;  %1180 = vmatprep.subr.bf16.mxu1 %v1839_v56  ;;  %v1859_v22 = vld [vmem:[#allocation7 + $0xe0] ss:$8 sps:$4 sm:$0xff]  }
  0x94   : > { %693 = vmatprep.subr.bf16.mxu0 %v1752_v23  ;;  %v1860_v23 = vld [vmem:[#allocation7 + $0xf4] ss:$8 sps:$4 sm:$0xff]  }
  0x96   : > { %1181 = vmatpush1.bf16.msra.mxu1 %v1841_v58 }
  0x97   : > { %694 = vmatpush1.bf16.msra.mxu0 %v1754_v24  ;;  %1182 = vmatprep.subr.bf16.mxu1 %v1842_v59  ;;  %v1862_v24 = vld [vmem:[#allocation7 + $0xf0] ss:$8 sps:$4 sm:$0xff]  }
  0x98   : > { %695 = vmatprep.subr.bf16.mxu0 %v1755_v25  ;;  %v1805_v25 = vld [vmem:[%s2244_s9 + $0xc0] ss:$8 sps:$4 sm:$0xff]  }
  0x9a   : > { %1183 = vmatpush1.bf16.msra.mxu1 %v1844_v60 }
  0x9b   : > { %696 = vmatpush1.bf16.msra.mxu0 %v1757_v26  ;;  %1184 = vmatprep.subr.bf16.mxu1 %v1845_v62  ;;  %v1806_v26 = vld [vmem:[%s2244_s9 + $0xd4] ss:$8 sps:$4 sm:$0xff]  }
  0x9c   : > { %697 = vmatprep.subr.bf16.mxu0 %v1758_v27  ;;  %v1808_v27 = vld [vmem:[%s2244_s9 + $0xd0] ss:$8 sps:$4 sm:$0xff]  }
  0x9e   : > { %1185 = vmatpush1.bf16.msra.mxu1 %v1847_v0 }
  0x9f   : > { %698 = vmatpush1.bf16.msra.mxu0 %v1760_v28  ;;  %1186 = vmatprep.subr.bf16.mxu1 %v1848_v1  ;;  %v1809_v28 = vld [vmem:[%s2244_s9 + $0xe4] ss:$8 sps:$4 sm:$0xff]  }
  0xa0   : > { %699 = vmatprep.subr.bf16.mxu0 %v1761_v29  ;;  %v1811_v29 = vld [vmem:[%s2244_s9 + $0xe0] ss:$8 sps:$4 sm:$0xff]  }
  0xa2   : > { %1187 = vmatpush1.bf16.msra.mxu1 %v1850_v2 }
  0xa3   : > { %700 = vmatpush1.bf16.msra.mxu0 %v1763_v30  ;;  %1188 = vmatprep.subr.bf16.mxu1 %v1851_v4  ;;  %v1812_v30 = vld [vmem:[%s2244_s9 + $0xf4] ss:$8 sps:$4 sm:$0xff]  }
  0xa4   : > { %701 = vmatprep.subr.bf16.mxu0 %v1764_v31  ;;  %v1814_v31 = vld [vmem:[%s2244_s9 + $0xf0] ss:$8 sps:$4 sm:$0xff]   ;;  %s1955_s9 = scalar_lea.vmem %s1954_s8, 16384 }
  0xa5   : > { %p1957_p9 = scmp.lt.s32.totalorder %s1955_s9, %s1949_s7 }
  0xa6   : > { %1189 = vmatpush1.bf16.msra.mxu1 %v1853_v6 }
  0xa7   : > { %702 = vmatpush1.bf16.msra.mxu0 %v1766_v35  ;;  %1190 = vmatprep.subr.bf16.mxu1 %v1854_v7  ;;  %v339_v35 = vld [vmem:[%s2560_s2] sm:$0x3]  ;;  %p1958_p12 = por %p1957_p9, %p1956_p7 }
  0xa8   : > { %v2299_v38 = vrot.slane %v339_v35, %v347_v36 }
  0xa9   : > { %p1959_p1 = pnand %p1958_p12, %p1952_p3 }
  0xaa   : > { %704 = vmatmul.mubr.bf16.vlgmr.msra.gmra.mrb[0].mxu0 %v1767_v37  ;;  %1191 = vmatpush1.bf16.msra.mxu1 %v1856_v18  ;;  %v2295_v37 = vrot.slane %v339_v35, %v343_v34 }
  0xab   : > { %713 = vmatprep.mubr.bf16.mxu0 %v1770_v39  ;;  %1192 = vmatprep.subr.bf16.mxu1 %v1857_v20 }
  0xae   : > { %1193 = vmatpush1.bf16.msra.mxu1 %v1859_v22 }
  0xaf   : > { %1194 = vmatprep.subr.bf16.mxu1 %v1860_v23 }
  0xb2   : > { %714 = vmatmul.mubr.bf16.gmra.mrb[4].mxu0 %v1772_v43  ;;  %1195 = vmatpush1.bf16.msra.mxu1 %v1862_v24 }
  0xb3   : > { %723 = vmatprep.mubr.bf16.mxu0 %v1773_v45 }
  0xba   : > { %724 = vmatmul.mubr.bf16.gmra.mrb[8].mxu0 %v1775_v49 }
  0xbb   : > { %733 = vmatprep.mubr.bf16.mxu0 %v1776_v51 }
  0xc2   : > { %734 = vmatmul.mubr.bf16.gmra.mrb[12].mxu0 %v1778_v55 }
  0xc3   : > { %743 = vmatprep.mubr.bf16.mxu0 %v1779_v57 }
  0xca   : > { %744 = vmatmul.mubr.bf16.gmra.mrb[16].mxu0 %v1781_v61 }
  0xcb   : > { %753 = vmatprep.mubr.bf16.mxu0 %v1782_v63 }
  0xd2   : > { %754 = vmatmul.mubr.bf16.gmra.mrb[20].mxu0 %v1784_v3 }
  0xd3   : > { %763 = vmatprep.mubr.bf16.mxu0 %v1785_v5 }
  0xda   : > { %764 = vmatmul.mubr.bf16.gmra.mrb[24].mxu0 %v1787_v8 }
  0xdb   : > { %773 = vmatprep.mubr.bf16.mxu0 %v1788_v9 }
  0xe2   : > { %774 = vmatmul.mubr.bf16.gmra.mrb[28].mxu0 %v1790_v10 }
  0xe3   : > { %783 = vmatprep.mubr.bf16.mxu0 %v1791_v11 }
  0xea   : > { %784 = vmatmul.mubr.bf16.gmra.mrb[32].mxu0 %v1793_v12 }
  0xeb   : > { %793 = vmatprep.mubr.bf16.mxu0 %v1794_v13 }
  0xf2   : > { %794 = vmatmul.mubr.bf16.gmra.mrb[36].mxu0 %v1796_v14 }
  0xf3   : > { %803 = vmatprep.mubr.bf16.mxu0 %v1797_v15 }
  0xfa   : > { %804 = vmatmul.mubr.bf16.gmra.mrb[40].mxu0 %v1799_v16 }
  0xfb   : > { %813 = vmatprep.mubr.bf16.mxu0 %v1800_v17 }
 0x102   : > { %814 = vmatmul.mubr.bf16.gmra.mrb[44].mxu0 %v1802_v19 }
 0x103   : > { %823 = vmatprep.mubr.bf16.mxu0 %v1803_v21 }
 0x10a   : > { %824 = vmatmul.mubr.bf16.gmra.mrb[48].mxu0 %v1805_v25 }
 0x10b   : > { %833 = vmatprep.mubr.bf16.mxu0 %v1806_v26 }
 0x112   : > { %834 = vmatmul.mubr.bf16.gmra.mrb[52].mxu0 %v1808_v27 }
 0x113   : > { %843 = vmatprep.mubr.bf16.mxu0 %v1809_v28 }
 0x11a   : > { %844 = vmatmul.mubr.bf16.gmra.mrb[56].mxu0 %v1811_v29 }
 0x11b   : > { %853 = vmatprep.mubr.bf16.mxu0 %v1812_v30 }
 0x122   : > { %854 = vmatmul.mubr.bf16.gmra.mrb[60].mxu0 %v1814_v31 }
 0x17d   : > { %v705_v39 = vpop.f32.mrb[0].mxu0 }
 0x17e   : > { %v706_v40 = vadd.f32 %v705_v39, %v2295_v37  ;;  %v707_v41 = vpop.f32.mrb[1].mxu0 }
 0x17f   : > { %v708_v42 = vadd.f32 %v707_v41, %v2299_v38  ;;  %v709_v43 = vpop.f32.mrb[2].mxu0 }
 0x180   : > { %v710_v44 = vadd.f32 %v709_v43, %v2295_v37  ;;  %v711_v45 = vpop.f32.mrb[3].mxu0  ;;  %v864_v47 = vmax.f32 %v706_v40, 0.0 }
 0x181   : > { %v712_v46 = vadd.f32 %v711_v45, %v2299_v38  ;;  %v865_v49 = vmax.f32 %v708_v42, 0.0 }
 0x182   : > { %v866_v48 = vmax.f32 %v710_v44, 0.0 }
 0x183   : > { %v867_v50 = vmax.f32 %v712_v46, 0.0 }
 0x184   : > { %v928_v51 = vpack.c.bf16 %v866_v48, %v864_v47 }
 0x185   : > { %v715_v52 = vpop.f32.mrb[4].mxu0  ;;  %v929_v53 = vpack.c.bf16 %v867_v50, %v865_v49 }
 0x186   : > { %v716_v54 = vadd.f32 %v715_v52, %v2295_v37  ;;  %v717_v55 = vpop.f32.mrb[5].mxu0 }
 0x187   : > { %v718_v56 = vadd.f32 %v717_v55, %v2299_v38  ;;  %v719_v57 = vpop.f32.mrb[6].mxu0  ;;  %1196 = vmatprep.mubr.bf16.mxu1 %v929_v53 }
 0x188   : > { %v720_v58 = vadd.f32 %v719_v57, %v2295_v37  ;;  %v721_v59 = vpop.f32.mrb[7].mxu0  ;;  %1197 = vmatmul.mubr.bf16.vlgmr.msra.gmra.mrb[0].mxu1 %v928_v51  ;;  %v868_v61 = vmax.f32 %v716_v54, 0.0 }
 0x189   : > { %v722_v60 = vadd.f32 %v721_v59, %v2299_v38  ;;  %v869_v63 = vmax.f32 %v718_v56, 0.0 }
 0x18a   : > { %v870_v62 = vmax.f32 %v720_v58, 0.0 }
 0x18b   : > { %v871_v0 = vmax.f32 %v722_v60, 0.0 }
 0x18c   : > { %v930_v1 = vpack.c.bf16 %v870_v62, %v868_v61 }
 0x18d   : > { %v931_v2 = vpack.c.bf16 %v871_v0, %v869_v63  ;;  %v725_v3 = vpop.f32.mrb[8].mxu0 }
 0x18e   : > { %v726_v4 = vadd.f32 %v725_v3, %v2295_v37  ;;  %v727_v5 = vpop.f32.mrb[9].mxu0 }
 0x18f   : > { %v728_v6 = vadd.f32 %v727_v5, %v2299_v38  ;;  %v729_v7 = vpop.f32.mrb[10].mxu0  ;;  %1206 = vmatprep.mubr.bf16.mxu1 %v931_v2 }
 0x190   : > { %v730_v8 = vadd.f32 %v729_v7, %v2295_v37  ;;  %v731_v9 = vpop.f32.mrb[11].mxu0  ;;  %1207 = vmatmul.mubr.bf16.gmra.mrb[4].mxu1 %v930_v1  ;;  %v872_v11 = vmax.f32 %v726_v4, 0.0 }
 0x191   : > { %v732_v10 = vadd.f32 %v731_v9, %v2299_v38  ;;  %v873_v13 = vmax.f32 %v728_v6, 0.0 }
 0x192   : > { %v874_v12 = vmax.f32 %v730_v8, 0.0 }
 0x193   : > { %v875_v14 = vmax.f32 %v732_v10, 0.0 }
 0x194   : > { %v932_v15 = vpack.c.bf16 %v874_v12, %v872_v11 }
 0x195   : > { %v933_v16 = vpack.c.bf16 %v875_v14, %v873_v13  ;;  %v735_v17 = vpop.f32.mrb[12].mxu0 }
 0x196   : > { %v736_v18 = vadd.f32 %v735_v17, %v2295_v37  ;;  %v737_v19 = vpop.f32.mrb[13].mxu0 }
 0x197   : > { %v738_v20 = vadd.f32 %v737_v19, %v2299_v38  ;;  %v739_v21 = vpop.f32.mrb[14].mxu0  ;;  %1216 = vmatprep.mubr.bf16.mxu1 %v933_v16 }
 0x198   : > { %v740_v22 = vadd.f32 %v739_v21, %v2295_v37  ;;  %v741_v23 = vpop.f32.mrb[15].mxu0  ;;  %1217 = vmatmul.mubr.bf16.gmra.mrb[8].mxu1 %v932_v15  ;;  %v876_v25 = vmax.f32 %v736_v18, 0.0 }
 0x199   : > { %v742_v24 = vadd.f32 %v741_v23, %v2299_v38  ;;  %v877_v27 = vmax.f32 %v738_v20, 0.0 }
 0x19a   : > { %v878_v26 = vmax.f32 %v740_v22, 0.0 }
 0x19b   : > { %v879_v28 = vmax.f32 %v742_v24, 0.0 }
 0x19c   : > { %v934_v29 = vpack.c.bf16 %v878_v26, %v876_v25 }
 0x19d   : > { %v935_v30 = vpack.c.bf16 %v879_v28, %v877_v27  ;;  %v745_v31 = vpop.f32.mrb[16].mxu0 }
 0x19e   : > { %v746_v32 = vadd.f32 %v745_v31, %v2295_v37  ;;  %v747_v35 = vpop.f32.mrb[17].mxu0 }
 0x19f   : > { %v748_v39 = vadd.f32 %v747_v35, %v2299_v38  ;;  %v749_v40 = vpop.f32.mrb[18].mxu0  ;;  %1226 = vmatprep.mubr.bf16.mxu1 %v935_v30 }
 0x1a0   : > { %v750_v41 = vadd.f32 %v749_v40, %v2295_v37  ;;  %v751_v42 = vpop.f32.mrb[19].mxu0  ;;  %1227 = vmatmul.mubr.bf16.gmra.mrb[12].mxu1 %v934_v29  ;;  %v880_v44 = vmax.f32 %v746_v32, 0.0 }
 0x1a1   : > { %v752_v43 = vadd.f32 %v751_v42, %v2299_v38  ;;  %v881_v46 = vmax.f32 %v748_v39, 0.0 }
 0x1a2   : > { %v882_v45 = vmax.f32 %v750_v41, 0.0 }
 0x1a3   : > { %v883_v47 = vmax.f32 %v752_v43, 0.0 }
 0x1a4   : > { %v936_v48 = vpack.c.bf16 %v882_v45, %v880_v44 }
 0x1a5   : > { %v937_v49 = vpack.c.bf16 %v883_v47, %v881_v46  ;;  %v755_v50 = vpop.f32.mrb[20].mxu0 }
 0x1a6   : > { %v756_v51 = vadd.f32 %v755_v50, %v2295_v37  ;;  %v757_v52 = vpop.f32.mrb[21].mxu0 }
 0x1a7   : > { %v758_v53 = vadd.f32 %v757_v52, %v2299_v38  ;;  %v759_v54 = vpop.f32.mrb[22].mxu0  ;;  %1236 = vmatprep.mubr.bf16.mxu1 %v937_v49 }
 0x1a8   : > { %v760_v55 = vadd.f32 %v759_v54, %v2295_v37  ;;  %v761_v56 = vpop.f32.mrb[23].mxu0  ;;  %1237 = vmatmul.mubr.bf16.gmra.mrb[16].mxu1 %v936_v48  ;;  %v884_v58 = vmax.f32 %v756_v51, 0.0 }
 0x1a9   : > { %v762_v57 = vadd.f32 %v761_v56, %v2299_v38  ;;  %v885_v60 = vmax.f32 %v758_v53, 0.0 }
 0x1aa   : > { %v886_v59 = vmax.f32 %v760_v55, 0.0 }
 0x1ab   : > { %v887_v61 = vmax.f32 %v762_v57, 0.0 }
 0x1ac   : > { %v938_v62 = vpack.c.bf16 %v886_v59, %v884_v58 }
 0x1ad   : > { %v939_v63 = vpack.c.bf16 %v887_v61, %v885_v60  ;;  %v765_v0 = vpop.f32.mrb[24].mxu0 }
 0x1ae   : > { %v766_v1 = vadd.f32 %v765_v0, %v2295_v37  ;;  %v767_v2 = vpop.f32.mrb[25].mxu0 }
 0x1af   : > { %v768_v3 = vadd.f32 %v767_v2, %v2299_v38  ;;  %v769_v4 = vpop.f32.mrb[26].mxu0  ;;  %1246 = vmatprep.mubr.bf16.mxu1 %v939_v63 }
 0x1b0   : > { %v770_v5 = vadd.f32 %v769_v4, %v2295_v37  ;;  %v771_v6 = vpop.f32.mrb[27].mxu0  ;;  %1247 = vmatmul.mubr.bf16.gmra.mrb[20].mxu1 %v938_v62  ;;  %v888_v8 = vmax.f32 %v766_v1, 0.0 }
 0x1b1   : > { %v772_v7 = vadd.f32 %v771_v6, %v2299_v38  ;;  %v889_v10 = vmax.f32 %v768_v3, 0.0 }
 0x1b2   : > { %v890_v9 = vmax.f32 %v770_v5, 0.0 }
 0x1b3   : > { %v891_v11 = vmax.f32 %v772_v7, 0.0 }
 0x1b4   : > { %v940_v12 = vpack.c.bf16 %v890_v9, %v888_v8 }
 0x1b5   : > { %v941_v13 = vpack.c.bf16 %v891_v11, %v889_v10  ;;  %v775_v14 = vpop.f32.mrb[28].mxu0 }
 0x1b6   : > { %v776_v15 = vadd.f32 %v775_v14, %v2295_v37  ;;  %v777_v16 = vpop.f32.mrb[29].mxu0 }
 0x1b7   : > { %v778_v17 = vadd.f32 %v777_v16, %v2299_v38  ;;  %v779_v18 = vpop.f32.mrb[30].mxu0  ;;  %1256 = vmatprep.mubr.bf16.mxu1 %v941_v13 }
 0x1b8   : > { %v780_v19 = vadd.f32 %v779_v18, %v2295_v37  ;;  %v781_v20 = vpop.f32.mrb[31].mxu0  ;;  %1257 = vmatmul.mubr.bf16.gmra.mrb[24].mxu1 %v940_v12  ;;  %v892_v22 = vmax.f32 %v776_v15, 0.0 }
 0x1b9   : > { %v782_v21 = vadd.f32 %v781_v20, %v2299_v38  ;;  %v893_v24 = vmax.f32 %v778_v17, 0.0 }
 0x1ba   : > { %v894_v23 = vmax.f32 %v780_v19, 0.0 }
 0x1bb   : > { %v895_v25 = vmax.f32 %v782_v21, 0.0 }
 0x1bc   : > { %v942_v26 = vpack.c.bf16 %v894_v23, %v892_v22 }
 0x1bd   : > { %v943_v27 = vpack.c.bf16 %v895_v25, %v893_v24  ;;  %v785_v28 = vpop.f32.mrb[32].mxu0 }
 0x1be   : > { %v786_v29 = vadd.f32 %v785_v28, %v2295_v37  ;;  %v787_v30 = vpop.f32.mrb[33].mxu0 }
 0x1bf   : > { %v788_v31 = vadd.f32 %v787_v30, %v2299_v38  ;;  %v789_v32 = vpop.f32.mrb[34].mxu0  ;;  %1266 = vmatprep.mubr.bf16.mxu1 %v943_v27 }
 0x1c0   : > { %v790_v35 = vadd.f32 %v789_v32, %v2295_v37  ;;  %v791_v39 = vpop.f32.mrb[35].mxu0  ;;  %1267 = vmatmul.mubr.bf16.gmra.mrb[28].mxu1 %v942_v26  ;;  %v896_v41 = vmax.f32 %v786_v29, 0.0 }
 0x1c1   : > { %v792_v40 = vadd.f32 %v791_v39, %v2299_v38  ;;  %v897_v43 = vmax.f32 %v788_v31, 0.0 }
 0x1c2   : > { %v898_v42 = vmax.f32 %v790_v35, 0.0 }
 0x1c3   : > { %v899_v44 = vmax.f32 %v792_v40, 0.0 }
 0x1c4   : > { %v944_v45 = vpack.c.bf16 %v898_v42, %v896_v41 }
 0x1c5   : > { %v945_v46 = vpack.c.bf16 %v899_v44, %v897_v43  ;;  %v795_v47 = vpop.f32.mrb[36].mxu0 }
 0x1c6   : > { %v796_v48 = vadd.f32 %v795_v47, %v2295_v37  ;;  %v797_v49 = vpop.f32.mrb[37].mxu0 }
 0x1c7   : > { %v798_v50 = vadd.f32 %v797_v49, %v2299_v38  ;;  %v799_v51 = vpop.f32.mrb[38].mxu0  ;;  %1276 = vmatprep.mubr.bf16.mxu1 %v945_v46 }
 0x1c8   : > { %v800_v52 = vadd.f32 %v799_v51, %v2295_v37  ;;  %v801_v53 = vpop.f32.mrb[39].mxu0  ;;  %1277 = vmatmul.mubr.bf16.gmra.mrb[32].mxu1 %v944_v45  ;;  %v900_v55 = vmax.f32 %v796_v48, 0.0 }
 0x1c9   : > { %v802_v54 = vadd.f32 %v801_v53, %v2299_v38  ;;  %v901_v57 = vmax.f32 %v798_v50, 0.0 }
 0x1ca   : > { %v902_v56 = vmax.f32 %v800_v52, 0.0 }
 0x1cb   : > { %v903_v58 = vmax.f32 %v802_v54, 0.0 }
 0x1cc   : > { %v946_v59 = vpack.c.bf16 %v902_v56, %v900_v55 }
 0x1cd   : > { %v947_v60 = vpack.c.bf16 %v903_v58, %v901_v57  ;;  %v805_v61 = vpop.f32.mrb[40].mxu0 }
 0x1ce   : > { %v806_v62 = vadd.f32 %v805_v61, %v2295_v37  ;;  %v807_v63 = vpop.f32.mrb[41].mxu0 }
 0x1cf   : > { %v808_v0 = vadd.f32 %v807_v63, %v2299_v38  ;;  %v809_v1 = vpop.f32.mrb[42].mxu0  ;;  %1286 = vmatprep.mubr.bf16.mxu1 %v947_v60 }
 0x1d0   : > { %v810_v2 = vadd.f32 %v809_v1, %v2295_v37  ;;  %v811_v3 = vpop.f32.mrb[43].mxu0  ;;  %1287 = vmatmul.mubr.bf16.gmra.mrb[36].mxu1 %v946_v59  ;;  %v904_v5 = vmax.f32 %v806_v62, 0.0 }
 0x1d1   : > { %v812_v4 = vadd.f32 %v811_v3, %v2299_v38  ;;  %v905_v7 = vmax.f32 %v808_v0, 0.0 }
 0x1d2   : > { %v906_v6 = vmax.f32 %v810_v2, 0.0 }
 0x1d3   : > { %v907_v8 = vmax.f32 %v812_v4, 0.0 }
 0x1d4   : > { %v948_v9 = vpack.c.bf16 %v906_v6, %v904_v5 }
 0x1d5   : > { %v949_v10 = vpack.c.bf16 %v907_v8, %v905_v7  ;;  %v815_v11 = vpop.f32.mrb[44].mxu0 }
 0x1d6   : > { %v816_v12 = vadd.f32 %v815_v11, %v2295_v37  ;;  %v817_v13 = vpop.f32.mrb[45].mxu0 }
 0x1d7   : > { %v818_v14 = vadd.f32 %v817_v13, %v2299_v38  ;;  %v819_v15 = vpop.f32.mrb[46].mxu0  ;;  %1296 = vmatprep.mubr.bf16.mxu1 %v949_v10 }
 0x1d8   : > { %v820_v16 = vadd.f32 %v819_v15, %v2295_v37  ;;  %v821_v17 = vpop.f32.mrb[47].mxu0  ;;  %1297 = vmatmul.mubr.bf16.gmra.mrb[40].mxu1 %v948_v9  ;;  %v908_v19 = vmax.f32 %v816_v12, 0.0 }
 0x1d9   : > { %v822_v18 = vadd.f32 %v821_v17, %v2299_v38  ;;  %v909_v21 = vmax.f32 %v818_v14, 0.0 }
 0x1da   : > { %v910_v20 = vmax.f32 %v820_v16, 0.0 }
 0x1db   : > { %v911_v22 = vmax.f32 %v822_v18, 0.0 }
 0x1dc   : > { %v950_v23 = vpack.c.bf16 %v910_v20, %v908_v19 }
 0x1dd   : > { %v951_v24 = vpack.c.bf16 %v911_v22, %v909_v21  ;;  %v825_v25 = vpop.f32.mrb[48].mxu0  ;;  %v992_v22 = vld [vmem:[%s2562_s4] sm:$0x3] }
 0x1de   : > { %v826_v26 = vadd.f32 %v825_v25, %v2295_v37  ;;  %v827_v27 = vpop.f32.mrb[49].mxu0 }
 0x1df   : > { %v828_v28 = vadd.f32 %v827_v27, %v2299_v38  ;;  %v829_v29 = vpop.f32.mrb[50].mxu0  ;;  %1306 = vmatprep.mubr.bf16.mxu1 %v951_v24 }
 0x1e0   : > { %v830_v30 = vadd.f32 %v829_v29, %v2295_v37  ;;  %v831_v31 = vpop.f32.mrb[51].mxu0  ;;  %1307 = vmatmul.mubr.bf16.gmra.mrb[44].mxu1 %v950_v23  ;;  %v912_v35 = vmax.f32 %v826_v26, 0.0 }
 0x1e1   : > { %v832_v32 = vadd.f32 %v831_v31, %v2299_v38  ;;  %v913_v40 = vmax.f32 %v828_v28, 0.0 }
 0x1e2   : > { %v914_v39 = vmax.f32 %v830_v30, 0.0 }
 0x1e3   : > { %v915_v41 = vmax.f32 %v832_v32, 0.0 }
 0x1e4   : > { %v952_v42 = vpack.c.bf16 %v914_v39, %v912_v35 }
 0x1e5   : > { %v953_v43 = vpack.c.bf16 %v915_v41, %v913_v40  ;;  %v835_v44 = vpop.f32.mrb[52].mxu0 }
 0x1e6   : > { %v836_v45 = vadd.f32 %v835_v44, %v2295_v37  ;;  %v837_v46 = vpop.f32.mrb[53].mxu0 }
 0x1e7   : > { %v838_v47 = vadd.f32 %v837_v46, %v2299_v38  ;;  %v839_v48 = vpop.f32.mrb[54].mxu0  ;;  %1316 = vmatprep.mubr.bf16.mxu1 %v953_v43 }
 0x1e8   : > { %v840_v49 = vadd.f32 %v839_v48, %v2295_v37  ;;  %v841_v50 = vpop.f32.mrb[55].mxu0  ;;  %1317 = vmatmul.mubr.bf16.gmra.mrb[48].mxu1 %v952_v42  ;;  %v916_v52 = vmax.f32 %v836_v45, 0.0 }
 0x1e9   : > { %v842_v51 = vadd.f32 %v841_v50, %v2299_v38  ;;  %v917_v54 = vmax.f32 %v838_v47, 0.0 }
 0x1ea   : > { %v918_v53 = vmax.f32 %v840_v49, 0.0 }
 0x1eb   : > { %v919_v55 = vmax.f32 %v842_v51, 0.0 }
 0x1ec   : > { %v954_v56 = vpack.c.bf16 %v918_v53, %v916_v52 }
 0x1ed   : > { %v955_v57 = vpack.c.bf16 %v919_v55, %v917_v54  ;;  %v845_v58 = vpop.f32.mrb[56].mxu0 }
 0x1ee   : > { %v846_v59 = vadd.f32 %v845_v58, %v2295_v37  ;;  %v847_v60 = vpop.f32.mrb[57].mxu0 }
 0x1ef   : > { %v848_v61 = vadd.f32 %v847_v60, %v2299_v38  ;;  %v849_v62 = vpop.f32.mrb[58].mxu0  ;;  %1326 = vmatprep.mubr.bf16.mxu1 %v955_v57 }
 0x1f0   : > { %v850_v63 = vadd.f32 %v849_v62, %v2295_v37  ;;  %v851_v0 = vpop.f32.mrb[59].mxu0  ;;  %1327 = vmatmul.mubr.bf16.gmra.mrb[52].mxu1 %v954_v56  ;;  %v920_v2 = vmax.f32 %v846_v59, 0.0 }
 0x1f1   : > { %v852_v1 = vadd.f32 %v851_v0, %v2299_v38  ;;  %v921_v4 = vmax.f32 %v848_v61, 0.0 }
 0x1f2   : > { %v922_v3 = vmax.f32 %v850_v63, 0.0 }
 0x1f3   : > { %v923_v5 = vmax.f32 %v852_v1, 0.0 }
 0x1f4   : > { %v956_v6 = vpack.c.bf16 %v922_v3, %v920_v2 }
 0x1f5   : > { %v957_v7 = vpack.c.bf16 %v923_v5, %v921_v4  ;;  %v855_v8 = vpop.f32.mrb[60].mxu0 }
 0x1f6   : > { %v856_v9 = vadd.f32 %v855_v8, %v2295_v37  ;;  %v857_v10 = vpop.f32.mrb[61].mxu0 }
 0x1f7   : > { %v858_v11 = vadd.f32 %v857_v10, %v2299_v38  ;;  %v859_v12 = vpop.f32.mrb[62].mxu0  ;;  %1336 = vmatprep.mubr.bf16.mxu1 %v957_v7 }
 0x1f8   : > { %v860_v13 = vadd.f32 %v859_v12, %v2295_v37  ;;  %v861_v14 = vpop.f32.mrb[63].mxu0  ;;  %1337 = vmatmul.mubr.bf16.gmra.mrb[56].mxu1 %v956_v6  ;;  %v924_v16 = vmax.f32 %v856_v9, 0.0  ;;  %v2371_v37 = vrot.slane %v992_v22, %v343_v34 }
 0x1f9   : > { %v862_v15 = vadd.f32 %v861_v14, %v2299_v38  ;;  %v925_v18 = vmax.f32 %v858_v11, 0.0  ;;  %v2375_v38 = vrot.slane %v992_v22, %v347_v36 }
 0x1fa   : > { %v926_v17 = vmax.f32 %v860_v13, 0.0 }
 0x1fb   : > { %v927_v19 = vmax.f32 %v862_v15, 0.0 }
 0x1fc   : > { %v958_v20 = vpack.c.bf16 %v926_v17, %v924_v16 }
 0x1fd   : > { %v959_v21 = vpack.c.bf16 %v927_v19, %v925_v18 }
 0x1ff   : > { %1346 = vmatprep.mubr.bf16.mxu1 %v959_v21 }
 0x200   : > { %1347 = vmatmul.mubr.bf16.gmra.mrb[60].mxu1 %v958_v20 }
 0x25b   : > { %v1198_v23 = vpop.f32.mrb[0].mxu1 }
 0x25c   : > { %v1199_v24 = vadd.f32 %v1198_v23, %v2371_v37  ;;  %v1200_v25 = vpop.f32.mrb[1].mxu1 }
 0x25d   : > { %v1201_v26 = vadd.f32 %v1200_v25, %v2375_v38  ;;  %v1202_v27 = vpop.f32.mrb[2].mxu1 }
 0x25e   : > { %1357 = vst [vmem:[%s2379_s28] sm:$0xff] %v1199_v24  ;;  %v1203_v33 = vadd.f32 %v1202_v27, %v2371_v37  ;;  %v1204_v34 = vpop.f32.mrb[3].mxu1 }
 0x25f   : > { %1358 = vst [vmem:[%s2379_s28 + $0x8] sm:$0xff] %v1201_v26  ;;  %v1205_v36 = vadd.f32 %v1204_v34, %v2375_v38 }
 0x260   : > { %1359 = vst [vmem:[%s2379_s28 + $0x10] sm:$0xff] %v1203_v33 }
 0x261   : > { %1360 = vst [vmem:[%s2379_s28 + $0x18] sm:$0xff] %v1205_v36 }
 0x263   : > { %v1208_v28 = vpop.f32.mrb[4].mxu1 }
 0x264   : > { %v1209_v29 = vadd.f32 %v1208_v28, %v2371_v37  ;;  %v1210_v30 = vpop.f32.mrb[5].mxu1 }
 0x265   : > { %v1211_v31 = vadd.f32 %v1210_v30, %v2375_v38  ;;  %v1212_v32 = vpop.f32.mrb[6].mxu1 }
 0x266   : > { %1361 = vst [vmem:[%s2379_s28 + $0x20] sm:$0xff] %v1209_v29  ;;  %v1213_v35 = vadd.f32 %v1212_v32, %v2371_v37  ;;  %v1214_v39 = vpop.f32.mrb[7].mxu1 }
 0x267   : > { %1362 = vst [vmem:[%s2379_s28 + $0x28] sm:$0xff] %v1211_v31  ;;  %v1215_v40 = vadd.f32 %v1214_v39, %v2375_v38 }
 0x268   : > { %1363 = vst [vmem:[%s2379_s28 + $0x30] sm:$0xff] %v1213_v35 }
 0x269   : > { %1364 = vst [vmem:[%s2379_s28 + $0x38] sm:$0xff] %v1215_v40 }
 0x26b   : > { %v1218_v41 = vpop.f32.mrb[8].mxu1 }
 0x26c   : > { %v1219_v42 = vadd.f32 %v1218_v41, %v2371_v37  ;;  %v1220_v43 = vpop.f32.mrb[9].mxu1 }
 0x26d   : > { %v1221_v44 = vadd.f32 %v1220_v43, %v2375_v38  ;;  %v1222_v45 = vpop.f32.mrb[10].mxu1 }
 0x26e   : > { %1365 = vst [vmem:[%s2379_s28 + $0x40] sm:$0xff] %v1219_v42  ;;  %v1223_v46 = vadd.f32 %v1222_v45, %v2371_v37  ;;  %v1224_v47 = vpop.f32.mrb[11].mxu1 }
 0x26f   : > { %1366 = vst [vmem:[%s2379_s28 + $0x48] sm:$0xff] %v1221_v44  ;;  %v1225_v48 = vadd.f32 %v1224_v47, %v2375_v38 }
 0x270   : > { %1367 = vst [vmem:[%s2379_s28 + $0x50] sm:$0xff] %v1223_v46 }
 0x271   : > { %1368 = vst [vmem:[%s2379_s28 + $0x58] sm:$0xff] %v1225_v48 }
 0x273   : > { %v1228_v49 = vpop.f32.mrb[12].mxu1 }
 0x274   : > { %v1229_v50 = vadd.f32 %v1228_v49, %v2371_v37  ;;  %v1230_v51 = vpop.f32.mrb[13].mxu1 }
 0x275   : > { %v1231_v52 = vadd.f32 %v1230_v51, %v2375_v38  ;;  %v1232_v53 = vpop.f32.mrb[14].mxu1 }
 0x276   : > { %1369 = vst [vmem:[%s2379_s28 + $0x60] sm:$0xff] %v1229_v50  ;;  %v1233_v54 = vadd.f32 %v1232_v53, %v2371_v37  ;;  %v1234_v55 = vpop.f32.mrb[15].mxu1 }
 0x277   : > { %1370 = vst [vmem:[%s2379_s28 + $0x68] sm:$0xff] %v1231_v52  ;;  %v1235_v56 = vadd.f32 %v1234_v55, %v2375_v38 }
 0x278   : > { %1371 = vst [vmem:[%s2379_s28 + $0x70] sm:$0xff] %v1233_v54 }
 0x279   : > { %1372 = vst [vmem:[%s2379_s28 + $0x78] sm:$0xff] %v1235_v56 }
 0x27b   : > { %v1238_v57 = vpop.f32.mrb[16].mxu1 }
 0x27c   : > { %v1239_v58 = vadd.f32 %v1238_v57, %v2371_v37  ;;  %v1240_v59 = vpop.f32.mrb[17].mxu1 }
 0x27d   : > { %v1241_v60 = vadd.f32 %v1240_v59, %v2375_v38  ;;  %v1242_v61 = vpop.f32.mrb[18].mxu1 }
 0x27e   : > { %1373 = vst [vmem:[%s2379_s28 + $0x80] sm:$0xff] %v1239_v58  ;;  %v1243_v62 = vadd.f32 %v1242_v61, %v2371_v37  ;;  %v1244_v63 = vpop.f32.mrb[19].mxu1 }
 0x27f   : > { %1374 = vst [vmem:[%s2379_s28 + $0x88] sm:$0xff] %v1241_v60  ;;  %v1245_v0 = vadd.f32 %v1244_v63, %v2375_v38 }
 0x280   : > { %1375 = vst [vmem:[%s2379_s28 + $0x90] sm:$0xff] %v1243_v62 }
 0x281   : > { %1376 = vst [vmem:[%s2379_s28 + $0x98] sm:$0xff] %v1245_v0 }
 0x283   : > { %v1248_v1 = vpop.f32.mrb[20].mxu1 }
 0x284   : > { %v1249_v2 = vadd.f32 %v1248_v1, %v2371_v37  ;;  %v1250_v3 = vpop.f32.mrb[21].mxu1 }
 0x285   : > { %v1251_v4 = vadd.f32 %v1250_v3, %v2375_v38  ;;  %v1252_v5 = vpop.f32.mrb[22].mxu1 }
 0x286   : > { %1377 = vst [vmem:[%s2379_s28 + $0xa0] sm:$0xff] %v1249_v2  ;;  %v1253_v6 = vadd.f32 %v1252_v5, %v2371_v37  ;;  %v1254_v7 = vpop.f32.mrb[23].mxu1 }
 0x287   : > { %1378 = vst [vmem:[%s2379_s28 + $0xa8] sm:$0xff] %v1251_v4  ;;  %v1255_v8 = vadd.f32 %v1254_v7, %v2375_v38 }
 0x288   : > { %1379 = vst [vmem:[%s2379_s28 + $0xb0] sm:$0xff] %v1253_v6 }
 0x289   : > { %1380 = vst [vmem:[%s2379_s28 + $0xb8] sm:$0xff] %v1255_v8 }
 0x28b   : > { %v1258_v9 = vpop.f32.mrb[24].mxu1 }
 0x28c   : > { %v1259_v10 = vadd.f32 %v1258_v9, %v2371_v37  ;;  %v1260_v11 = vpop.f32.mrb[25].mxu1 }
 0x28d   : > { %v1261_v12 = vadd.f32 %v1260_v11, %v2375_v38  ;;  %v1262_v13 = vpop.f32.mrb[26].mxu1 }
 0x28e   : > { %1381 = vst [vmem:[%s2379_s28 + $0xc0] sm:$0xff] %v1259_v10  ;;  %v1263_v14 = vadd.f32 %v1262_v13, %v2371_v37  ;;  %v1264_v15 = vpop.f32.mrb[27].mxu1 }
 0x28f   : > { %1382 = vst [vmem:[%s2379_s28 + $0xc8] sm:$0xff] %v1261_v12  ;;  %v1265_v16 = vadd.f32 %v1264_v15, %v2375_v38 }
 0x290   : > { %1383 = vst [vmem:[%s2379_s28 + $0xd0] sm:$0xff] %v1263_v14 }
 0x291   : > { %1384 = vst [vmem:[%s2379_s28 + $0xd8] sm:$0xff] %v1265_v16 }
 0x293   : > { %v1268_v17 = vpop.f32.mrb[28].mxu1 }
 0x294   : > { %v1269_v18 = vadd.f32 %v1268_v17, %v2371_v37  ;;  %v1270_v19 = vpop.f32.mrb[29].mxu1 }
 0x295   : > { %v1271_v20 = vadd.f32 %v1270_v19, %v2375_v38  ;;  %v1272_v21 = vpop.f32.mrb[30].mxu1 }
 0x296   : > { %1385 = vst [vmem:[%s2379_s28 + $0xe0] sm:$0xff] %v1269_v18  ;;  %v1273_v22 = vadd.f32 %v1272_v21, %v2371_v37  ;;  %v1274_v23 = vpop.f32.mrb[31].mxu1 }
 0x297   : > { %1386 = vst [vmem:[%s2379_s28 + $0xe8] sm:$0xff] %v1271_v20  ;;  %v1275_v24 = vadd.f32 %v1274_v23, %v2375_v38 }
 0x298   : > { %1387 = vst [vmem:[%s2379_s28 + $0xf0] sm:$0xff] %v1273_v22 }
 0x299   : > { %1388 = vst [vmem:[%s2379_s28 + $0xf8] sm:$0xff] %v1275_v24 }
 0x29b   : > { %v1278_v25 = vpop.f32.mrb[32].mxu1 }
 0x29c   : > { %v1279_v26 = vadd.f32 %v1278_v25, %v2371_v37  ;;  %v1280_v27 = vpop.f32.mrb[33].mxu1 }
 0x29d   : > { %v1281_v33 = vadd.f32 %v1280_v27, %v2375_v38  ;;  %v1282_v34 = vpop.f32.mrb[34].mxu1 }
 0x29e   : > { %1389 = vst [vmem:[%s2379_s28 + $0x100] sm:$0xff] %v1279_v26  ;;  %v1283_v36 = vadd.f32 %v1282_v34, %v2371_v37  ;;  %v1284_v28 = vpop.f32.mrb[35].mxu1 }
 0x29f   : > { %1390 = vst [vmem:[%s2379_s28 + $0x108] sm:$0xff] %v1281_v33  ;;  %v1285_v29 = vadd.f32 %v1284_v28, %v2375_v38 }
 0x2a0   : > { %1391 = vst [vmem:[%s2379_s28 + $0x110] sm:$0xff] %v1283_v36 }
 0x2a1   : > { %1392 = vst [vmem:[%s2379_s28 + $0x118] sm:$0xff] %v1285_v29 }
 0x2a3   : > { %v1288_v30 = vpop.f32.mrb[36].mxu1 }
 0x2a4   : > { %v1289_v31 = vadd.f32 %v1288_v30, %v2371_v37  ;;  %v1290_v32 = vpop.f32.mrb[37].mxu1 }
 0x2a5   : > { %v1291_v35 = vadd.f32 %v1290_v32, %v2375_v38  ;;  %v1292_v39 = vpop.f32.mrb[38].mxu1 }
 0x2a6   : > { %1393 = vst [vmem:[%s2379_s28 + $0x120] sm:$0xff] %v1289_v31  ;;  %v1293_v40 = vadd.f32 %v1292_v39, %v2371_v37  ;;  %v1294_v41 = vpop.f32.mrb[39].mxu1 }
 0x2a7   : > { %1394 = vst [vmem:[%s2379_s28 + $0x128] sm:$0xff] %v1291_v35  ;;  %v1295_v42 = vadd.f32 %v1294_v41, %v2375_v38 }
 0x2a8   : > { %1395 = vst [vmem:[%s2379_s28 + $0x130] sm:$0xff] %v1293_v40 }
 0x2a9   : > { %1396 = vst [vmem:[%s2379_s28 + $0x138] sm:$0xff] %v1295_v42 }
 0x2ab   : > { %v1298_v43 = vpop.f32.mrb[40].mxu1 }
 0x2ac   : > { %v1299_v44 = vadd.f32 %v1298_v43, %v2371_v37  ;;  %v1300_v45 = vpop.f32.mrb[41].mxu1 }
 0x2ad   : > { %v1301_v46 = vadd.f32 %v1300_v45, %v2375_v38  ;;  %v1302_v47 = vpop.f32.mrb[42].mxu1 }
 0x2ae   : > { %1397 = vst [vmem:[%s2379_s28 + $0x140] sm:$0xff] %v1299_v44  ;;  %v1303_v48 = vadd.f32 %v1302_v47, %v2371_v37  ;;  %v1304_v49 = vpop.f32.mrb[43].mxu1 }
 0x2af   : > { %1398 = vst [vmem:[%s2379_s28 + $0x148] sm:$0xff] %v1301_v46  ;;  %v1305_v50 = vadd.f32 %v1304_v49, %v2375_v38 }
 0x2b0   : > { %1399 = vst [vmem:[%s2379_s28 + $0x150] sm:$0xff] %v1303_v48 }
 0x2b1   : > { %1400 = vst [vmem:[%s2379_s28 + $0x158] sm:$0xff] %v1305_v50 }
 0x2b3   : > { %v1308_v51 = vpop.f32.mrb[44].mxu1 }
 0x2b4   : > { %v1309_v52 = vadd.f32 %v1308_v51, %v2371_v37  ;;  %v1310_v53 = vpop.f32.mrb[45].mxu1 }
 0x2b5   : > { %v1311_v54 = vadd.f32 %v1310_v53, %v2375_v38  ;;  %v1312_v55 = vpop.f32.mrb[46].mxu1 }
 0x2b6   : > { %1401 = vst [vmem:[%s2379_s28 + $0x160] sm:$0xff] %v1309_v52  ;;  %v1313_v56 = vadd.f32 %v1312_v55, %v2371_v37  ;;  %v1314_v57 = vpop.f32.mrb[47].mxu1 }
 0x2b7   : > { %1402 = vst [vmem:[%s2379_s28 + $0x168] sm:$0xff] %v1311_v54  ;;  %v1315_v58 = vadd.f32 %v1314_v57, %v2375_v38 }
 0x2b8   : > { %1403 = vst [vmem:[%s2379_s28 + $0x170] sm:$0xff] %v1313_v56 }
 0x2b9   : > { %1404 = vst [vmem:[%s2379_s28 + $0x178] sm:$0xff] %v1315_v58 }
 0x2bb   : > { %v1318_v59 = vpop.f32.mrb[48].mxu1 }
 0x2bc   : > { %v1319_v60 = vadd.f32 %v1318_v59, %v2371_v37  ;;  %v1320_v61 = vpop.f32.mrb[49].mxu1 }
 0x2bd   : > { %v1321_v62 = vadd.f32 %v1320_v61, %v2375_v38  ;;  %v1322_v63 = vpop.f32.mrb[50].mxu1 }
 0x2be   : > { %1405 = vst [vmem:[%s2379_s28 + $0x180] sm:$0xff] %v1319_v60  ;;  %v1323_v0 = vadd.f32 %v1322_v63, %v2371_v37  ;;  %v1324_v1 = vpop.f32.mrb[51].mxu1 }
 0x2bf   : > { %1406 = vst [vmem:[%s2379_s28 + $0x188] sm:$0xff] %v1321_v62  ;;  %v1325_v2 = vadd.f32 %v1324_v1, %v2375_v38 }
 0x2c0   : > { %1407 = vst [vmem:[%s2379_s28 + $0x190] sm:$0xff] %v1323_v0 }
 0x2c1   : > { %1408 = vst [vmem:[%s2379_s28 + $0x198] sm:$0xff] %v1325_v2 }
 0x2c3   : > { %v1328_v3 = vpop.f32.mrb[52].mxu1 }
 0x2c4   : > { %v1329_v4 = vadd.f32 %v1328_v3, %v2371_v37  ;;  %v1330_v5 = vpop.f32.mrb[53].mxu1 }
 0x2c5   : > { %v1331_v6 = vadd.f32 %v1330_v5, %v2375_v38  ;;  %v1332_v7 = vpop.f32.mrb[54].mxu1 }
 0x2c6   : > { %1409 = vst [vmem:[%s2379_s28 + $0x1a0] sm:$0xff] %v1329_v4  ;;  %v1333_v8 = vadd.f32 %v1332_v7, %v2371_v37  ;;  %v1334_v9 = vpop.f32.mrb[55].mxu1 }
 0x2c7   : > { %1410 = vst [vmem:[%s2379_s28 + $0x1a8] sm:$0xff] %v1331_v6  ;;  %v1335_v10 = vadd.f32 %v1334_v9, %v2375_v38 }
 0x2c8   : > { %1411 = vst [vmem:[%s2379_s28 + $0x1b0] sm:$0xff] %v1333_v8 }
 0x2c9   : > { %1412 = vst [vmem:[%s2379_s28 + $0x1b8] sm:$0xff] %v1335_v10 }
 0x2cb   : > { %v1338_v11 = vpop.f32.mrb[56].mxu1 }
 0x2cc   : > { %v1339_v12 = vadd.f32 %v1338_v11, %v2371_v37  ;;  %v1340_v13 = vpop.f32.mrb[57].mxu1 }
 0x2cd   : > { %v1341_v14 = vadd.f32 %v1340_v13, %v2375_v38  ;;  %v1342_v15 = vpop.f32.mrb[58].mxu1 }
 0x2ce   : > { %1413 = vst [vmem:[%s2379_s28 + $0x1c0] sm:$0xff] %v1339_v12  ;;  %v1343_v16 = vadd.f32 %v1342_v15, %v2371_v37  ;;  %v1344_v17 = vpop.f32.mrb[59].mxu1 }
 0x2cf   : > { %1414 = vst [vmem:[%s2379_s28 + $0x1c8] sm:$0xff] %v1341_v14  ;;  %v1345_v18 = vadd.f32 %v1344_v17, %v2375_v38 }
 0x2d0   : > { %1415 = vst [vmem:[%s2379_s28 + $0x1d0] sm:$0xff] %v1343_v16 }
 0x2d1   : > { %1416 = vst [vmem:[%s2379_s28 + $0x1d8] sm:$0xff] %v1345_v18 }
 0x2d3   : > { %v1348_v19 = vpop.f32.mrb[60].mxu1 }
 0x2d4   : > { %v1349_v20 = vadd.f32 %v1348_v19, %v2371_v37  ;;  %v1350_v21 = vpop.f32.mrb[61].mxu1 }
 0x2d5   : > { %v1351_v22 = vadd.f32 %v1350_v21, %v2375_v38  ;;  %v1352_v23 = vpop.f32.mrb[62].mxu1 }
 0x2d6   : > { %1417 = vst [vmem:[%s2379_s28 + $0x1e0] sm:$0xff] %v1349_v20  ;;  %v1353_v24 = vadd.f32 %v1352_v23, %v2371_v37  ;;  %v1354_v25 = vpop.f32.mrb[63].mxu1 }
 0x2d7   : > { %1418 = vst [vmem:[%s2379_s28 + $0x1e8] sm:$0xff] %v1351_v22  ;;  %v1355_v26 = vadd.f32 %v1354_v25, %v2375_v38 }
 0x2d8   : > { %1419 = vst [vmem:[%s2379_s28 + $0x1f0] sm:$0xff] %v1353_v24 }
 0x2d9   : > { %1420 = vst [vmem:[%s2379_s28 + $0x1f8] sm:$0xff] %v1355_v26 }
 0x2da   : > { %1962 = shalt.err (!%p1959_p1)
}
 0x2db   : > { %s1963_s24 = scalar_lea.hbm %s2508_s17, 8192  ;;  %s1967_s16 = scalar_lea.hbm %s2563_s5, 16384 }
 0x2dc   : > { %p1964_p13 = scmp.ne.s32.totalorder %s2508_s17, %s1963_s24  ;;  %p1968_p4 = scmp.lt.u32.totalorder %s2508_s17, %s2563_s5 }
 0x2dd   : > { %p1969_p5 = scmp.lt.u32.totalorder %s1967_s16, %s1963_s24  ;;  %p1971_p11 = scmp.lt.u32.totalorder %s1963_s24, %s2508_s17 }
 0x2de   : > { %p1965_p6 = pnand %p1964_p13, %p2577_p0 }
 0x2df   : > { %p1970_p8 = por %p1969_p5, %p1968_p4 }
 0x2e0   : > { %p1966_p10 = pneg %p1965_p6 }
 0x2e1   : > { %p1972_p2 = por %p1971_p11, %p1970_p8 }
 0x2e3   : > { %p1973_p3 = pnand %p1972_p2, %p1966_p10 }
 0x2e5   : > { %1976 = shalt.err (!%p1973_p3)
}
 0x2e6   : > { %s2027_s12 = smov 256   ;;  %s2028_s30 = smov 16  }
 0x2e7   : > { %1658 = dma.vmem_to_hbm [thread:$0]  (%p2577_p0), %s2510_s13, 8192, %s2508_s17, %s1422_s22, %s2027_s12, %s2027_s12, %s2028_s30  }
 0x2e8 PF: > { %s1451_s11 = sand.u32 1, %s2007_s18   ;;  %p2578_p7 = scmp.ne.s32.totalorder %s2568_s25, 0 }
 0x2e9   : > { %p2579_p9 = scmp.ge.s32.totalorder %s2019_s21, 2  ;;  %s1452_s7 = scalar_lea.sflag [#allocation4], %s1451_s11 }
 0x2eb   : > { %p1672_p12 = pnand %p2579_p9, %p2578_p7 }
 0x2ed   : > { %2002 = dma.done.wait (!%p1672_p12), %s1452_s7, 8192  }
 0x2ee   : > { %2004 = vsyncadd (!%p1672_p12), %s1452_s7, 4294959104  ;;  %p19_p1 = scmp.ge.s32.totalorder %s2175_s29, 4   ;;  %s2580_s18 = smov %s2011_s19 }
 0x2ef   : > { %s2581_s19 = smov %s2015_s20  ;;  %s2582_s20 = smov %s2191_s27 }
 0x2f0   : > { %s2583_s21 = smov %s2175_s29  ;;  %21 = sbr.rel (!%p19_p1) target bundleno = 6 (0x6), region = 93 }
 0x2f7   :  { %1457 = vsyncpa [#allocation3], 1 }
 0x2f8   :  { %1459 = vsyncpa [#allocation3 + $0x1], 1 }
 0x2f9   :  { %1460 = vsyncpa [#allocation6], 1 }
 0x2fa   :  { %1461 = vsyncpa [#allocation4], 1 }
 0x2fb   :  { %1463 = vsyncpa [#allocation4 + $0x1], 1 }

</bundles_post_ra>
